<compile_context>
chip_gen: v7x
topology: tpu7x:2x2x1
jax: 0.10.0
libtpu: 0.0.40
codegen_flags: <defaults>
</compile_context>

<pallas_src>
import functools

import jax
import jax.numpy as jnp
from jax.experimental import pallas as pl
from jax.experimental.pallas import tpu as pltpu

_EPS = 1e-5
_LANE = 128
_TARGET_BLOCK_BYTES = 2 << 20      # ~2 MiB input block per grid step
_VMEM_LIMIT_BYTES = 32 * 1024 * 1024


def _round_up(v, m):
    return ((v + m - 1) // m) * m


def _pick_d_tile(d_pad, max_tile=1024):
    """Largest multiple-of-128 tile <= max_tile that divides the padded D."""
    if d_pad <= max_tile:
        return d_pad
    best = _LANE
    for t in range(_LANE, max_tile + 1, _LANE):
        if d_pad % t == 0:
            best = t
    return best


def _pick_group(n_chunks, vbs, chunk_bytes,
                target_bytes=_TARGET_BLOCK_BYTES):
    """Number of ghost batches fused per grid step.

    Constraints: divides n_chunks, block stays ~target_bytes, block rows are a
    multiple of 8 (sublane tiling), and >= 2 grid steps remain along the batch
    axis so the parallel grid axis can still shard across v7x's 2 TensorCores.
    """
    g_cap = max(1, target_bytes // max(chunk_bytes, 1))
    best = None
    for g in range(1, n_chunks + 1):
        if n_chunks % g != 0 or g > g_cap:
            continue
        rows_ok = (g * vbs) % 8 == 0 or g == n_chunks
        steps_ok = (n_chunks // g) >= 2 or n_chunks == 1
        if rows_ok and steps_ok:
            best = g
    if best is None:
        # Fallback: one block covering the full batch (block == full array dim
        # is always a legal block shape, regardless of sublane alignment).
        best = n_chunks
    return best


def _gbn_kernel(x_ref, gamma_ref, beta_ref, o_ref, *, group, vbs):
    # x_ref block: (group * vbs, d_tile) == `group` fused ghost batches.
    d_tile = x_ref.shape[-1]
    x = x_ref[...].astype(jnp.float32).reshape(group, vbs, d_tile)

    # Per-ghost-batch, per-feature statistics (biased variance, like BN train).
    mean = jnp.mean(x, axis=1, keepdims=True)                  # (G, 1, Dt)
    xc = x - mean
    var = jnp.mean(xc * xc, axis=1, keepdims=True)             # (G, 1, Dt)
    inv_std = jax.lax.rsqrt(var + _EPS)

    gamma = gamma_ref[...].astype(jnp.float32)                 # (1, Dt)
    beta = beta_ref[...].astype(jnp.float32)                   # (1, Dt)

    # Fused normalize + affine as a single per-feature scale/shift:
    #   y = gamma * (x - mean) * inv_std + beta = x * scale + shift
    scale = gamma * inv_std                                    # (G, 1, Dt)
    shift = beta - mean * scale                                # (G, 1, Dt)
    y = x * scale + shift

    o_ref[...] = y.reshape(group * vbs, d_tile).astype(o_ref.dtype)


@functools.partial(jax.jit, static_argnames=("virtual_batch_size",))
def gbn_forward(x, gamma, beta, *, virtual_batch_size=128):
    """Ghost BatchNorm forward. x: (B, D); gamma, beta: (D,)."""
    B, D = x.shape
    # Matches torch.chunk only for equal-sized chunks (documented limitation).
    assert B % virtual_batch_size == 0, "B must be divisible by virtual_batch_size"
    n_chunks = B // virtual_batch_size

    # --- Lane-dense feature layout: pad D to a multiple of 128 and tile it. ---
    d_pad = _round_up(D, _LANE)
    d_tile = _pick_d_tile(d_pad)
    n_d = d_pad // d_tile

    if d_pad != D:
        # Padded feature columns are all-zero (x, gamma, beta) -> scale=0,
        # shift=0 -> padded outputs are exactly 0 and sliced off below.
        x_p = jnp.pad(x, ((0, 0), (0, d_pad - D)))
        gamma_p = jnp.pad(gamma, (0, d_pad - D))
        beta_p = jnp.pad(beta, (0, d_pad - D))
    else:
        x_p, gamma_p, beta_p = x, gamma, beta

    gamma2 = gamma_p.reshape(1, d_pad)
    beta2 = beta_p.reshape(1, d_pad)

    # --- Fuse ghost batches per grid step to reach the HBM roofline. ---
    chunk_bytes = virtual_batch_size * d_tile * x.dtype.itemsize
    group = _pick_group(n_chunks, virtual_batch_size, chunk_bytes)
    rows = group * virtual_batch_size
    n_b = n_chunks // group

    kernel = functools.partial(_gbn_kernel, group=group, vbs=virtual_batch_size)

    out = pl.pallas_call(
        kernel,
        out_shape=jax.ShapeDtypeStruct((B, d_pad), x.dtype),
        grid_spec=pl.GridSpec(
            grid=(n_b, n_d),
            in_specs=[
                pl.BlockSpec((rows, d_tile), lambda i, j: (i, j)),
                # gamma/beta: block index varies only with the D axis, so they
                # stay VMEM-resident across all batch steps of a given D tile.
                pl.BlockSpec((1, d_tile), lambda i, j: (0, j)),
                pl.BlockSpec((1, d_tile), lambda i, j: (0, j)),
            ],
            out_specs=pl.BlockSpec((rows, d_tile), lambda i, j: (i, j)),
        ),
        compiler_params=pltpu.CompilerParams(
            dimension_semantics=("parallel", "parallel"),
            vmem_limit_bytes=_VMEM_LIMIT_BYTES,
        ),
    )(x_p, gamma2, beta2)

    if d_pad != D:
        out = out[:, :D]
    return out


def _reference_gbn(x, gamma, beta, virtual_batch_size):
    # Pure-JAX reference mirroring the PyTorch module in training mode.
    B, D = x.shape
    chunks = jnp.split(x, B // virtual_batch_size, axis=0)
    outs = []
    for c in chunks:
        m = jnp.mean(c, axis=0, keepdims=True)
        v = jnp.mean((c - m) ** 2, axis=0, keepdims=True)
        outs.append((c - m) / jnp.sqrt(v + _EPS) * gamma + beta)
    return jnp.concatenate(outs, axis=0)


if __name__ == "__main__":
    input_dim = 32
    virtual_batch_size = 8
    batch = 32  # -> 4 ghost batches; kernel fuses 2 per block -> 2 grid steps

    key = jax.random.PRNGKey(0)
    kx, kg, kb = jax.random.split(key, 3)
    x = jax.random.normal(kx, (batch, input_dim), dtype=jnp.float32)
    # Non-trivial affine parameters to exercise the scale/shift path.
    gamma = 1.0 + 0.1 * jax.random.normal(kg, (input_dim,), dtype=jnp.float32)
    beta = 0.1 * jax.random.normal(kb, (input_dim,), dtype=jnp.float32)

    out = gbn_forward(x, gamma, beta, virtual_batch_size=virtual_batch_size)
    out = jax.block_until_ready(out)

    ref = _reference_gbn(x, gamma, beta, virtual_batch_size)
    assert out.shape == (batch, input_dim)
    assert jnp.allclose(out, ref, atol=1e-5, rtol=1e-5), "mismatch vs reference"

    print("KERNEL_OK")
</pallas_src>

<mosaic_0001>
module attributes {stable_mosaic.version = 11 : i64} {
  func.func @_gbn_kernel(%arg0: i32, %arg1: i32, %arg2: memref<16x128xf32, #tpu.memory_space<vmem>>, %arg3: memref<1x128xf32, #tpu.memory_space<vmem>>, %arg4: memref<1x128xf32, #tpu.memory_space<vmem>>, %arg5: memref<16x128xf32, #tpu.memory_space<vmem>>) attributes {dimension_semantics = [#tpu.dimension_semantics<parallel>, #tpu.dimension_semantics<parallel>], iteration_bounds = array<i64: 2, 1>, scalar_prefetch = 0 : i64, scratch_operands = 0 : i64, tpu.core_type = #tpu.core_type<tc>, window_params = [{transform_indices = @transform_0, window_bounds = array<i64: 16, 128>}, {transform_indices = @transform_1, window_bounds = array<i64: 1, 128>}, {transform_indices = @transform_2, window_bounds = array<i64: 1, 128>}, {transform_indices = @transform_3, window_bounds = array<i64: 16, 128>}]} {
    %c0 = arith.constant 0 : index
    %c0_0 = arith.constant 0 : index
    %0 = vector.load %arg2[%c0, %c0_0] : memref<16x128xf32, #tpu.memory_space<vmem>>, vector<16x128xf32>
    %1 = vector.shape_cast %0 : vector<16x128xf32> to vector<2x8x128xf32>
    %cst = arith.constant dense<0.000000e+00> : vector<2x128xf32>
    %2 = vector.multi_reduction <add>, %1, %cst [1] : vector<2x8x128xf32> to vector<2x128xf32>
    %3 = vector.shape_cast %2 : vector<2x128xf32> to vector<2x1x128xf32>
    %cst_1 = arith.constant 8.000000e+00 : f32
    %4 = vector.broadcast %cst_1 : f32 to vector<2x1x128xf32>
    %5 = arith.divf %3, %4 : vector<2x1x128xf32>
    %6 = vector.broadcast %5 : vector<2x1x128xf32> to vector<2x8x128xf32>
    %7 = arith.subf %1, %6 : vector<2x8x128xf32>
    %8 = arith.mulf %7, %7 : vector<2x8x128xf32>
    %cst_2 = arith.constant dense<0.000000e+00> : vector<2x128xf32>
    %9 = vector.multi_reduction <add>, %8, %cst_2 [1] : vector<2x8x128xf32> to vector<2x128xf32>
    %10 = vector.shape_cast %9 : vector<2x128xf32> to vector<2x1x128xf32>
    %cst_3 = arith.constant 8.000000e+00 : f32
    %11 = vector.broadcast %cst_3 : f32 to vector<2x1x128xf32>
    %12 = arith.divf %10, %11 : vector<2x1x128xf32>
    %cst_4 = arith.constant 9.99999974E-6 : f32
    %13 = vector.broadcast %cst_4 : f32 to vector<2x1x128xf32>
    %14 = arith.addf %12, %13 : vector<2x1x128xf32>
    %15 = math.rsqrt %14 : vector<2x1x128xf32>
    %c0_5 = arith.constant 0 : index
    %c0_6 = arith.constant 0 : index
    %16 = vector.load %arg3[%c0_5, %c0_6] : memref<1x128xf32, #tpu.memory_space<vmem>>, vector<1x128xf32>
    %c0_7 = arith.constant 0 : index
    %c0_8 = arith.constant 0 : index
    %17 = vector.load %arg4[%c0_7, %c0_8] : memref<1x128xf32, #tpu.memory_space<vmem>>, vector<1x128xf32>
    %18 = vector.shape_cast %16 : vector<1x128xf32> to vector<1x1x128xf32>
    %19 = vector.broadcast %18 : vector<1x1x128xf32> to vector<2x1x128xf32>
    %20 = arith.mulf %19, %15 : vector<2x1x128xf32>
    %21 = arith.mulf %5, %20 : vector<2x1x128xf32>
    %22 = vector.shape_cast %17 : vector<1x128xf32> to vector<1x1x128xf32>
    %23 = vector.broadcast %22 : vector<1x1x128xf32> to vector<2x1x128xf32>
    %24 = arith.subf %23, %21 : vector<2x1x128xf32>
    %25 = vector.broadcast %20 : vector<2x1x128xf32> to vector<2x8x128xf32>
    %26 = arith.mulf %1, %25 : vector<2x8x128xf32>
    %27 = vector.broadcast %24 : vector<2x1x128xf32> to vector<2x8x128xf32>
    %28 = arith.addf %26, %27 : vector<2x8x128xf32>
    %29 = vector.shape_cast %28 : vector<2x8x128xf32> to vector<16x128xf32>
    %c0_9 = arith.constant 0 : index
    %c0_10 = arith.constant 0 : index
    %30 = vector.load %arg5[%c0_9, %c0_10] : memref<16x128xf32, #tpu.memory_space<vmem>>, vector<16x128xf32>
    tpu.vector_store %arg5[%c0_9, %c0_10], %29 {strides = array<i32>} : memref<16x128xf32, #tpu.memory_space<vmem>>, vector<16x128xf32>,
    return
  }
  func.func @transform_0(%arg0: i32, %arg1: i32) -> (i32, i32) {
    %c0_i32 = arith.constant 0 : i32
    return %arg0, %arg1 : i32, i32
  }
  func.func @transform_1(%arg0: i32, %arg1: i32) -> (i32, i32) {
    %c0_i32 = arith.constant 0 : i32
    %c0_i32_0 = arith.constant 0 : i32
    return %c0_i32, %arg1 : i32, i32
  }
  func.func @transform_2(%arg0: i32, %arg1: i32) -> (i32, i32) {
    %c0_i32 = arith.constant 0 : i32
    %c0_i32_0 = arith.constant 0 : i32
    return %c0_i32, %arg1 : i32, i32
  }
  func.func @transform_3(%arg0: i32, %arg1: i32) -> (i32, i32) {
    %c0_i32 = arith.constant 0 : i32
    return %arg0, %arg1 : i32, i32
  }
}

</mosaic_0001>

<bundles_post_ra>
// kernel: gbn_forward.1
= control target key start
LH: loop header
LB: loop body
LE: loop exit
PB: predicated region body
PF: predicated region fallthrough
CT: control target
= control target key end

     0   :  { %8 = vsyncpa [#allocation3], 0  ;;  %s716_s0 = inlined_call_operand.vmem [shape: f32[32,128], index: 0, kind: input, shape index: {}]   ;;  %s717_s1 = inlined_call_operand.vmem [shape: f32[1,128], index: 1, kind: input, shape index: {}]   ;;  %s718_s2 = inlined_call_operand.vmem [shape: f32[1,128], index: 2, kind: input, shape index: {}]   ;;  %s719_s3 = inlined_call_operand.hbm [shape: f32[32,128], index: 3, kind: output, shape index: {}]  }
   0x1   :  { %10 = vsyncpa [#allocation3 + $0x1], 0  ;;  %s596_s12 = smov 0   ;;  %s598_s13 = smov 0  }
   0x2   :  { %s600_s14 = smov 0   ;;  %s602_s15 = smov 0  }
   0x3   :  { %s604_s16 = smov 0   ;;  %s606_s17 = smov 0  }
   0x4 LB: > { %s416_s18 = sadd.s32 4294967295, %s571_s17   ;;  %s417_s19 = sadd.s32 4294967294, %s571_s17   ;;  %s571_s17 = sphi %s606_s17, %s16_s17   ;;  %s567_s16 = sphi %s604_s16, %s726_s16   ;;  %s563_s15 = sphi %s602_s15, %s725_s15   ;;  %s559_s14 = sphi %s600_s14, %s724_s14   ;;  %s555_s13 = sphi %s598_s13, %s723_s13   ;;  %s551_s12 = sphi %s596_s12, %s722_s12  }
   0x5   : > { %s28_s20 = sadd.s32 1, %s567_s16  ;;  %s117_s21 = sadd.s32 1, %s559_s14 }
   0x6   : > { %p30_p0 = scmp.ge.s32.totalorder %s28_s20, 2  ;;  %p127_p1 = scmp.ne.s32.totalorder %s559_s14, %s555_s13 }
   0x7   : > { %p128_p2 = scmp.eq.s32.totalorder %s416_s18, 1  ;;  %p133_p3 = scmp.ne.s32.totalorder %s555_s13, %s551_s12 }
   0x8   : > { %s728_s20 = smov (%p30_p0, %s28_s20), 0  ;;  %p134_p5 = scmp.eq.s32.totalorder %s417_s19, 1 }
   0x9   : > { %p636_p4 = por %p128_p2, %p127_p1  ;;  %s112_s23 = ssub.s32 %s567_s16, %s728_s20 }
   0xa   : > { %p422_p6 = scmp.ge.s32.totalorder %s571_s17, 1  ;;  %p115_p7 = scmp.eq.s32.totalorder %s112_s23, 0 }
   0xb   : > { %p643_p8 = por %p134_p5, %p133_p3  ;;  %p176_p9 = scmp.lt.s32.totalorder %s571_s17, 3 }
   0xc   : > { %s649_s25 = scalar_select %p115_p7, %s559_s14, %s117_s21  }
   0xd   : > { %p177_p10 = pnand %p422_p6, %p176_p9 }
   0xe   : > { %s424_s26 = sshll.u32 (!%p177_p10), %s563_s15, 1  ;;  %v274_v36 = vlaneseq (!%p177_p10)  ;;  %s206_s4 = sand.u32 (!%p177_p10), 1, %s555_s13   ;;  %v264_v38 = vld [vmem:[%s717_s1] sm:$0x1] (!%p177_p10) }
   0xf   : > { %180 = sbr.rel (%p177_p10) target bundleno = 97 (0x61), region = 32  ;;  %p210_p11 = scmp.lt.s32.totalorder (!%p177_p10), %s424_s26, 3  ;;  %v265_v43 = vld [vmem:[%s718_s2] sm:$0x1] (!%p177_p10) }
  0x10   : > { %v275_v37 = vshrl.u32 (!%p177_p10), %v274_v36, 7  ;;  %s423_s7 = sshll.u32 (!%p177_p10), %s206_s4, 4  ;;  %s431_s18 = sshll.u32 (!%p177_p10), %s563_s15, 8 }
  0x11   : > { %s208_s10 = scalar_lea.vmem (!%p177_p10), [#allocation2], %s423_s7  ;;  %s668_s23 = scalar_lea.hbm (!%p177_p10), %s719_s3, %s431_s18 }
  0x12   : > { %v276_v39 = vsub.s32 (!%p177_p10), 0, %v275_v37  ;;  %s317_s11 = sshll.u32 (!%p177_p10), %s208_s10, 4  ;;  %s573_s15 = smov (!%p177_p10), [#allocation2]   ;;  %s663_s11 = int_to_ptr.vmem [resolvable:$true] %s317_s11 }
  0x13   : > { %s497_s28 = sshll.u32 (!%p177_p10), %s573_s15, 4  ;;  %s498_s28 = int_to_ptr.vmem [resolvable:$false] %s497_s28 }
  0x14   : > { %s499_s29 = scalar_lea.vmem (!%p177_p10), %s498_s28, 512  ;;  %p500_p1 = scmp.lt.s32.totalorder (!%p177_p10), %s663_s11, %s498_s28 }
  0x16   : > { %s730_s26 = smov (!%p210_p11, %s424_s26), 3 }
  0x17   : > { %s425_s27 = sshll.u32 %s730_s26, 3  ;;  %s670_s26 = scalar_lea.sflag [#allocation3], %s206_s4 }
  0x18   : > { %s216_s30 = scalar_lea.vmem %s716_s0, %s425_s27  ;;  %s493_s27 = scalar_lea.vmem %s663_s11, 256 }
  0x19   : > { %v225_v0 = vld [vmem:[%s216_s30] sm:$0xff]  ;;  %v226_v1 = vld [vmem:[%s216_s30 + $0x8] sm:$0xff]  ;;  %p494_p12 = scmp.ne.s32.totalorder %s663_s11, %s493_s27  ;;  %p501_p2 = scmp.lt.s32.totalorder %s499_s29, %s493_s27 }
  0x1a   : > { %v227_v2 = vrot.slane %v225_v0, 4  ;;  %v233_v3 = vrot.slane %v226_v1, 4 }
  0x1b   : > { %p495_p13 = pnand %p494_p12, %p636_p4  ;;  %p502_p3 = por %p501_p2, %p500_p1 }
  0x1c   : > { %v228_v4 = vadd.f32 %v227_v2, %v225_v0  ;;  %v234_v5 = vadd.f32 %v233_v3, %v226_v1 }
  0x1d   : > { %p496_p0 = pneg %p495_p13 }
  0x1e   : > { %v229_v6 = vrot.slane %v228_v4, 2  ;;  %v235_v7 = vrot.slane %v234_v5, 2 }
  0x1f   : > { %p503_p5 = pnand %p502_p3, %p496_p0 }
  0x20   : > { %v230_v8 = vadd.f32 %v229_v6, %v228_v4  ;;  %v236_v9 = vadd.f32 %v235_v7, %v234_v5 }
  0x22   : > { %v231_v10 = vrot.slane %v230_v8, 1  ;;  %v237_v11 = vrot.slane %v236_v9, 1 }
  0x24   : > { %v232_v12 = vadd.f32 %v231_v10, %v230_v8  ;;  %v238_v13 = vadd.f32 %v237_v11, %v236_v9 }
  0x26   : > { %v240_v14 = vmul.f32 0.125, %v232_v12  ;;  %v241_v15 = vmul.f32 0.125, %v238_v13 }
  0x28   : > { %v242_v16 = vsub.f32 %v225_v0, %v240_v14  ;;  %v243_v17 = vsub.f32 %v226_v1, %v241_v15 }
  0x2a   : > { %v244_v18 = vmul.f32 %v242_v16, %v242_v16  ;;  %v245_v19 = vmul.f32 %v243_v17, %v243_v17 }
  0x2c   : > { %v246_v20 = vrot.slane %v244_v18, 4  ;;  %v252_v21 = vrot.slane %v245_v19, 4 }
  0x2e   : > { %v247_v22 = vadd.f32 %v246_v20, %v244_v18  ;;  %v253_v23 = vadd.f32 %v252_v21, %v245_v19 }
  0x30   : > { %v248_v24 = vrot.slane %v247_v22, 2  ;;  %v254_v25 = vrot.slane %v253_v23, 2 }
  0x32   : > { %v249_v26 = vadd.f32 %v248_v24, %v247_v22  ;;  %v255_v27 = vadd.f32 %v254_v25, %v253_v23 }
  0x34   : > { %v250_v28 = vrot.slane %v249_v26, 1  ;;  %v256_v29 = vrot.slane %v255_v27, 1 }
  0x36   : > { %v251_v30 = vadd.f32 %v250_v28, %v249_v26  ;;  %v257_v31 = vadd.f32 %v256_v29, %v255_v27 }
  0x38   : > { %v258_v32 = vmul.f32 0.125, %v251_v30  ;;  %v259_v33 = vmul.f32 0.125, %v257_v31 }
  0x3a   : > { %v260_v34 = vadd.f32 1e-05, %v258_v32  ;;  %v261_v35 = vadd.f32 1e-05, %v259_v33 }
  0x3c   : > { %489 = vrsqrt.f32 %v260_v34 }
  0x3d   : > { %491 = vrsqrt.f32 %v261_v35 }
  0x46   : > { %v490_v40 = vpop.eup %489 }
  0x47   : > { %v492_v41 = vpop.eup %491  ;;  %v266_v42 = vmul.f32 %v490_v40, %v264_v38 }
  0x48   : > { %v267_v44 = vmul.f32 %v492_v41, %v264_v38 }
  0x49   : > { %v268_v45 = vmul.f32 %v266_v42, %v240_v14  ;;  %v277_v46 = vrot.slane %v266_v42, %v276_v39 }
  0x4a   : > { %v269_v47 = vmul.f32 %v267_v44, %v241_v15  ;;  %v281_v48 = vrot.slane %v267_v44, %v276_v39 }
  0x4b   : > { %v270_v49 = vsub.f32 %v265_v43, %v268_v45  ;;  %v284_v50 = vmul.f32 %v277_v46, %v225_v0 }
  0x4c   : > { %v271_v51 = vsub.f32 %v265_v43, %v269_v47  ;;  %v285_v52 = vmul.f32 %v281_v48, %v226_v1 }
  0x4d   : > { %v291_v53 = vrot.slane %v270_v49, %v276_v39 }
  0x4e   : > { %v295_v54 = vrot.slane %v271_v51, %v276_v39 }
  0x4f   : > { %v298_v55 = vadd.f32 %v291_v53, %v284_v50 }
  0x50   : > { %v299_v56 = vadd.f32 %v295_v54, %v285_v52 }
  0x51   : > { %300 = vst [vmem:[%s208_s10] sm:$0xff] %v298_v55 }
  0x52   : > { %301 = vst [vmem:[%s208_s10 + $0x8] sm:$0xff] %v299_v56 }
  0x53   : > { %506 = shalt.err (!%p503_p5)
}
  0x54   : > { %s507_s30 = scalar_lea.hbm %s668_s23, 256  ;;  %s511_s6 = scalar_lea.hbm %s719_s3, 512 }
  0x55   : > { %p508_p6 = scmp.ne.s32.totalorder %s668_s23, %s507_s30  ;;  %p512_p10 = scmp.lt.u32.totalorder %s668_s23, %s719_s3 }
  0x56   : > { %p513_p11 = scmp.lt.u32.totalorder %s511_s6, %s507_s30  ;;  %p515_p13 = scmp.lt.u32.totalorder %s507_s30, %s668_s23 }
  0x57   : > { %p509_p7 = pnand %p508_p6, %p636_p4 }
  0x58   : > { %p514_p12 = por %p513_p11, %p512_p10 }
  0x59   : > { %p510_p9 = pneg %p509_p7 }
  0x5a   : > { %p516_p0 = por %p515_p13, %p514_p12 }
  0x5c   : > { %p517_p1 = pnand %p516_p0, %p510_p9 }
  0x5e   : > { %520 = shalt.err (!%p517_p1)
}
  0x5f   : > { %s574_s9 = smov 128   ;;  %s575_s10 = smov 8  }
  0x60   : > { %432 = dma.vmem_to_hbm [thread:$0]  (%p636_p4), %s663_s11, 256, %s668_s23, %s670_s26, %s574_s9, %s574_s9, %s575_s10  }
  0x61 PF: > { %p438_p2 = scmp.ge.s32.totalorder %s571_s17, 2  ;;  %s332_s18 = sand.u32 1, %s551_s12  }
  0x62   : > { %s333_s19 = scalar_lea.sflag [#allocation3], %s332_s18 }
  0x63   : > { %p435_p3 = pnand %p438_p2, %p643_p8 }
  0x65   : > { %546 = dma.done.wait (!%p435_p3), %s333_s19, 256  }
  0x66   : > { %548 = vsyncadd (!%p435_p3), %s333_s19, 4294967040  ;;  %s16_s17 = sadd.s32 1, %s571_s17   ;;  %s722_s12 = smov %s555_s13 }
  0x67   : > { %p13_p5 = scmp.ge.s32.totalorder %s16_s17, 4   ;;  %s723_s13 = smov %s559_s14 }
  0x68   : > { %s724_s14 = smov %s649_s25  ;;  %s725_s15 = smov %s567_s16 }
  0x69   : > { %s726_s16 = smov %s728_s20  ;;  %15 = sbr.rel (!%p13_p5) target bundleno = 4 (0x4), region = 73 }
  0x70   :  { %338 = vsyncpa [#allocation3], 1 }
  0x71   :  { %340 = vsyncpa [#allocation3 + $0x1], 1 }

</bundles_post_ra>
